<compile_context>
chip_gen: v5e
topology: v5e:2x2
jax: 0.10.0
libtpu: 0.0.40
codegen_flags: <defaults>
</compile_context>

<pallas_src>
import functools

import jax
import jax.numpy as jnp
from jax.experimental import pallas as pl
from jax.experimental.pallas import tpu as pltpu


def _round_up(x, m):
    return (x + m - 1) // m * m


def _batch_tiling(B):
    """Returns (tm, b_pad): 8-aligned tiles, <=256 rows, >=2 grid steps if B>16."""
    if B <= 16:
        tm = _round_up(B, 8)
        return tm, tm
    tm = min(256, _round_up(-(-B // 2), 8))   # ceil(B/2) rounded up to 8
    return tm, _round_up(B, tm)


def _masked_log_softmax(logits_f32, out_valid):
    """log_softmax over the first `out_valid` lanes; padded lanes masked out."""
    col = jax.lax.broadcasted_iota(jnp.int32, logits_f32.shape, 1)
    logits = jnp.where(col < out_valid, logits_f32, jnp.finfo(jnp.float32).min)
    m = jnp.max(logits, axis=-1, keepdims=True)
    s = logits - m
    lse = jnp.log(jnp.sum(jnp.exp(s), axis=-1, keepdims=True))
    return s - lse


# --------------------------------------------------------------------------
# Path 1: fully fused kernel (all weights VMEM-resident, one pallas_call).
# --------------------------------------------------------------------------
def _fused_mlp_kernel(*refs, n_layers, out_valid, act_dtype, bias_slices):
    """refs = (x_ref, w0_ref..w_{L-1}_ref, b_all_ref, o_ref)."""
    x_ref = refs[0]
    w_refs = refs[1:1 + n_layers]
    b_ref = refs[1 + n_layers]
    o_ref = refs[-1]

    h = x_ref[...]                                # bf16 or f32 activations
    for l in range(n_layers):
        off, width = bias_slices[l]
        y = jnp.dot(h, w_refs[l][...], preferred_element_type=jnp.float32)
        y = y + b_ref[:, off:off + width]         # f32 bias add (broadcast)
        if l < n_layers - 1:
            # ReLU in f32, carried to the next layer in the MXU input dtype.
            h = jnp.maximum(y, 0.0).astype(act_dtype)
        else:
            o_ref[...] = _masked_log_softmax(y, out_valid)


def _fused_forward(x_p, w_list, b_all, bias_slices, out_valid, tm, act_dtype,
                   single_buffer):
    b_pad, in_pad = x_p.shape
    out_pad = w_list[-1].shape[1]
    n_layers = len(w_list)

    # VMEM budget: resident weights/biases (x buffer count) + double-buffered
    # batch tiles of x / out + activation / accumulator working set.
    wb = 1 if single_buffer else 2
    weight_bytes = sum(int(w.size) * w.dtype.itemsize for w in w_list) * wb
    bias_bytes = int(b_all.size) * 4 * wb
    io_bytes = 2 * tm * (in_pad * x_p.dtype.itemsize + out_pad * 4)
    act_bytes = 2 * tm * max(w.shape[1] for w in w_list) * 4
    needed = weight_bytes + bias_bytes + io_bytes + act_bytes
    vmem_limit = int(min(64 << 20, max(32 << 20, int(needed * 1.4))))

    wspec_kwargs = dict(pipeline_mode=pl.Buffered(1)) if single_buffer else {}
    in_specs = [pl.BlockSpec((tm, in_pad), lambda i: (i, 0))]
    for w in w_list:
        in_specs.append(pl.BlockSpec(w.shape, lambda i: (0, 0), **wspec_kwargs))
    in_specs.append(pl.BlockSpec(b_all.shape, lambda i: (0, 0), **wspec_kwargs))

    flops = 2 * b_pad * sum(w.shape[0] * w.shape[1] for w in w_list)
    bytes_accessed = (sum(int(a.size) * a.dtype.itemsize
                          for a in [x_p, *w_list, b_all])
                      + b_pad * out_pad * 4)
    cost = pl.CostEstimate(flops=flops,
                           transcendentals=b_pad * out_pad,
                           bytes_accessed=bytes_accessed)

    kernel = functools.partial(_fused_mlp_kernel, n_layers=n_layers,
                               out_valid=out_valid, act_dtype=act_dtype,
                               bias_slices=tuple(bias_slices))
    return pl.pallas_call(
        kernel,
        out_shape=jax.ShapeDtypeStruct((b_pad, out_pad), jnp.float32),
        grid=(b_pad // tm,),
        in_specs=in_specs,
        out_specs=pl.BlockSpec((tm, out_pad), lambda i: (i, 0)),
        compiler_params=pltpu.CompilerParams(
            dimension_semantics=("parallel",),      # batch tiles -> megacore
            vmem_limit_bytes=vmem_limit),
        cost_estimate=cost,
    )(x_p, *w_list, b_all)


# --------------------------------------------------------------------------
# Path 2: weight-streaming fallback (one pallas_call per layer, K-tiled).
# --------------------------------------------------------------------------
def _layer_kernel(x_ref, w_ref, b_ref, o_ref, acc_ref, *, is_last, out_valid):
    @pl.when(pl.program_id(1) == 0)
    def _():
        acc_ref[...] = jnp.zeros_like(acc_ref)

    acc_ref[...] += jnp.dot(x_ref[...], w_ref[...],
                            preferred_element_type=jnp.float32)

    @pl.when(pl.program_id(1) == pl.num_programs(1) - 1)
    def _():
        y = acc_ref[...] + b_ref[...]
        if is_last:
            o_ref[...] = _masked_log_softmax(y, out_valid).astype(o_ref.dtype)
        else:
            o_ref[...] = jnp.maximum(y, 0.0).astype(o_ref.dtype)


def _pick_tk(k_pad, n_pad, itemsize, budget=16 << 20):
    """Largest multiple of 128 dividing k_pad whose double-buffered weight
    block fits the budget."""
    for tk in range(min(k_pad, 1024), 127, -128):
        if k_pad % tk == 0 and 2 * tk * n_pad * itemsize <= budget:
            return tk
    return 128


def _streamed_forward(x_p, w_list, b_list, out_valid, tm, act_dtype,
                      single_buffer):
    h = x_p
    n_layers = len(w_list)
    bspec_kwargs = dict(pipeline_mode=pl.Buffered(1)) if single_buffer else {}
    for l, (w_p, b_p) in enumerate(zip(w_list, b_list)):
        is_last = (l == n_layers - 1)
        k_pad, n_pad = w_p.shape
        b_rows = h.shape[0]
        tk = _pick_tk(k_pad, n_pad, w_p.dtype.itemsize)
        out_dtype = jnp.float32 if is_last else act_dtype

        needed = (2 * (tm * tk * h.dtype.itemsize + tk * n_pad * w_p.dtype.itemsize)
                  + 2 * n_pad * 4
                  + tm * n_pad * 4
                  + 2 * tm * n_pad * jnp.dtype(out_dtype).itemsize)
        vmem_limit = int(min(64 << 20, max(32 << 20, int(needed * 1.4))))

        kernel = functools.partial(_layer_kernel, is_last=is_last,
                                   out_valid=out_valid)
        h = pl.pallas_call(
            kernel,
            out_shape=jax.ShapeDtypeStruct((b_rows, n_pad), out_dtype),
            grid=(b_rows // tm, k_pad // tk),
            in_specs=[pl.BlockSpec((tm, tk), lambda i, k: (i, k)),
                      pl.BlockSpec((tk, n_pad), lambda i, k: (k, 0)),
                      pl.BlockSpec((1, n_pad), lambda i, k: (0, 0),
                                   **bspec_kwargs)],
            out_specs=pl.BlockSpec((tm, n_pad), lambda i, k: (i, 0)),
            scratch_shapes=[pltpu.VMEM((tm, n_pad), jnp.float32)],
            compiler_params=pltpu.CompilerParams(
                dimension_semantics=("parallel", "arbitrary"),
                vmem_limit_bytes=vmem_limit),
        )(h, w_p, b_p)
    return h


# --------------------------------------------------------------------------
# Wrapper
# --------------------------------------------------------------------------
def pallas_mlp(x, params, output_size, *, mxu_dtype=None, force_stream=False):
    """Eval-mode forward.  x: (B, input_size); params: [(w_t (in,out), b (1,out))]."""
    B, in_size = x.shape
    n_layers = len(params)
    widths = [w_t.shape[1] for (w_t, _) in params]

    # bf16 MXU inputs for non-trivial widths (v6e/v7x native); f32 for tiny
    # demo sizes so results match the f32 reference tightly.
    if mxu_dtype is None:
        mxu_dtype = jnp.bfloat16 if max([in_size] + widths) >= 256 else jnp.float32
    act_dtype = mxu_dtype

    tm, b_pad = _batch_tiling(B)
    in_pad = _round_up(in_size, 128)
    x_p = jnp.zeros((b_pad, in_pad), mxu_dtype).at[:B, :in_size].set(
        x.astype(mxu_dtype))

    # Lane-dense zero padding of weights (stored in MXU dtype) and f32 biases.
    w_list, b_list, bias_slices = [], [], []
    prev_pad, off = in_pad, 0
    for (w_t, b) in params:
        fin, fout = w_t.shape
        fout_pad = _round_up(fout, 128)
        w_p = jnp.zeros((prev_pad, fout_pad), mxu_dtype).at[:fin, :fout].set(
            w_t.astype(mxu_dtype))
        b_p = jnp.zeros((1, fout_pad), jnp.float32).at[:, :fout].set(
            jnp.reshape(b, (1, -1)).astype(jnp.float32))
        w_list.append(w_p)
        b_list.append(b_p)
        bias_slices.append((off, fout_pad))
        off += fout_pad
        prev_pad = fout_pad
    b_all = jnp.concatenate(b_list, axis=1)

    weight_bytes = sum(int(w.size) * w.dtype.itemsize for w in w_list)
    use_stream = force_stream or weight_bytes > (44 << 20)  # v7x VMEM guard

    def run(single_buffer):
        if use_stream:
            return _streamed_forward(x_p, w_list, b_list, output_size, tm,
                                     act_dtype, single_buffer)
        return _fused_forward(x_p, w_list, b_all, bias_slices, output_size,
                              tm, act_dtype, single_buffer)

    try:
        out_padded = run(True)
    except Exception:
        # TODO(synk): drop once pl.Buffered(1) single-buffering is guaranteed
        # on every deployed jax version; this retries with default buffering.
        out_padded = run(False)

    return out_padded[:B, :output_size]


def init_params(key, depth, width, input_size, output_size):
    """Deterministic params matching nn.Linear init (weight stored transposed)."""
    dims = [(input_size, width)]
    for _ in range(depth - 1):
        dims.append((width, width))
    dims.append((width, output_size))

    params = []
    for (fan_in, fan_out) in dims:
        key, kw, kb = jax.random.split(key, 3)
        bound = 1.0 / jnp.sqrt(jnp.float32(fan_in))
        w_t = jax.random.uniform(kw, (fan_in, fan_out), jnp.float32, -bound, bound)
        b = jax.random.uniform(kb, (1, fan_out), jnp.float32, -bound, bound)
        params.append((w_t, b))
    return params


def feedforward(params, x, **kwargs):
    """Eval-mode forward pass of PyTorchFeedForward."""
    output_size = params[-1][0].shape[1]
    return pallas_mlp(x, params, output_size, **kwargs)


def _ref_forward(params, x):
    """Pure-JAX reference for correctness checking."""
    y = x
    for (w_t, b) in params[:-1]:
        y = jnp.maximum(y @ w_t + b, 0.0)
    logits = y @ params[-1][0] + params[-1][1]
    return jax.nn.log_softmax(logits, axis=-1)


if __name__ == "__main__":
    depth = 2
    width = 32
    input_size = 16
    output_size = 10

    key = jax.random.PRNGKey(0)
    key, kx1, kx2 = jax.random.split(key, 3)
    x1 = jax.random.normal(kx1, (8, input_size), jnp.float32)     # single tile
    x2 = jax.random.normal(kx2, (40, input_size), jnp.float32)    # multi-tile
    params = init_params(key, depth, width, input_size, output_size)

    # 1) Fused f32 path, single batch tile.
    out1 = jax.block_until_ready(feedforward(params, x1))
    ref1 = _ref_forward(params, x1)
    assert out1.shape == (8, output_size)
    assert bool(jnp.allclose(out1, ref1, atol=1e-5, rtol=1e-5))

    # 2) Fused f32 path, >=2 grid steps + padded batch rows.
    out2 = jax.block_until_ready(feedforward(params, x2))
    ref2 = _ref_forward(params, x2)
    assert bool(jnp.allclose(out2, ref2, atol=1e-5, rtol=1e-5))

    # 3) bf16 MXU path (default for wide models) — looser tolerance.
    out3 = jax.block_until_ready(
        pallas_mlp(x1, params, output_size, mxu_dtype=jnp.bfloat16))
    assert bool(jnp.allclose(out3, ref1, atol=5e-2, rtol=5e-2))

    # 4) Weight-streaming fallback path (used when weights exceed VMEM).
    out4 = jax.block_until_ready(
        pallas_mlp(x2, params, output_size, force_stream=True))
    assert bool(jnp.allclose(out4, ref2, atol=1e-5, rtol=1e-5))

    row_logsumexp = jax.scipy.special.logsumexp(out1, axis=-1)
    assert bool(jnp.all(jnp.abs(row_logsumexp) < 1e-4))

    print("KERNEL_OK")
</pallas_src>

<mosaic_0001>
module attributes {stable_mosaic.version = 11 : i64} {
  func.func @_fused_mlp_kernel(%arg0: i32, %arg1: memref<8x128xf32, #tpu.memory_space<vmem>>, %arg2: memref<128x128xf32, #tpu.memory_space<vmem>>, %arg3: memref<128x128xf32, #tpu.memory_space<vmem>>, %arg4: memref<128x128xf32, #tpu.memory_space<vmem>>, %arg5: memref<1x384xf32, #tpu.memory_space<vmem>>, %arg6: memref<8x128xf32, #tpu.memory_space<vmem>>) attributes {dimension_semantics = [#tpu.dimension_semantics<parallel>], iteration_bounds = array<i64: 1>, scalar_prefetch = 0 : i64, scratch_operands = 0 : i64, tpu.core_type = #tpu.core_type<tc>, window_params = [{transform_indices = @transform_0, window_bounds = array<i64: 8, 128>}, {pipeline_mode = #tpu.pipeline_mode<synchronous>, transform_indices = @transform_1, window_bounds = array<i64: 128, 128>}, {pipeline_mode = #tpu.pipeline_mode<synchronous>, transform_indices = @transform_2, window_bounds = array<i64: 128, 128>}, {pipeline_mode = #tpu.pipeline_mode<synchronous>, transform_indices = @transform_3, window_bounds = array<i64: 128, 128>}, {pipeline_mode = #tpu.pipeline_mode<synchronous>, transform_indices = @transform_4, window_bounds = array<i64: 1, 384>}, {transform_indices = @transform_5, window_bounds = array<i64: 8, 128>}]} {
    %c0 = arith.constant 0 : index
    %c0_0 = arith.constant 0 : index
    %0 = vector.load %arg1[%c0, %c0_0] : memref<8x128xf32, #tpu.memory_space<vmem>>, vector<8x128xf32>
    %c0_1 = arith.constant 0 : index
    %c0_2 = arith.constant 0 : index
    %1 = vector.load %arg2[%c0_1, %c0_2] : memref<128x128xf32, #tpu.memory_space<vmem>>, vector<128x128xf32>
    %cst = arith.constant dense<0.000000e+00> : vector<8x128xf32>
    %2 = tpu.matmul %0, %1, %cst {dimension_numbers = #tpu.dot_dimension_numbers<[1], [0], [0], [1], [0, 0, 1, 1], [], []>} : vector<8x128xf32>, vector<128x128xf32>, vector<8x128xf32> -> vector<8x128xf32>
    %c0_3 = arith.constant 0 : index
    %c0_4 = arith.constant 0 : index
    %3 = vector.load %arg5[%c0_3, %c0_4] : memref<1x384xf32, #tpu.memory_space<vmem>>, vector<1x128xf32>
    %4 = vector.broadcast %3 : vector<1x128xf32> to vector<8x128xf32>
    %5 = arith.addf %2, %4 : vector<8x128xf32>
    %cst_5 = arith.constant 0.000000e+00 : f32
    %6 = vector.broadcast %cst_5 : f32 to vector<8x128xf32>
    %7 = arith.maximumf %5, %6 : vector<8x128xf32>
    %c0_6 = arith.constant 0 : index
    %c0_7 = arith.constant 0 : index
    %8 = vector.load %arg3[%c0_6, %c0_7] : memref<128x128xf32, #tpu.memory_space<vmem>>, vector<128x128xf32>
    %cst_8 = arith.constant dense<0.000000e+00> : vector<8x128xf32>
    %9 = tpu.matmul %7, %8, %cst_8 {dimension_numbers = #tpu.dot_dimension_numbers<[1], [0], [0], [1], [0, 0, 1, 1], [], []>} : vector<8x128xf32>, vector<128x128xf32>, vector<8x128xf32> -> vector<8x128xf32>
    %c0_9 = arith.constant 0 : index
    %c128 = arith.constant 128 : index
    %10 = vector.load %arg5[%c0_9, %c128] : memref<1x384xf32, #tpu.memory_space<vmem>>, vector<1x128xf32>
    %11 = vector.broadcast %10 : vector<1x128xf32> to vector<8x128xf32>
    %12 = arith.addf %9, %11 : vector<8x128xf32>
    %cst_10 = arith.constant 0.000000e+00 : f32
    %13 = vector.broadcast %cst_10 : f32 to vector<8x128xf32>
    %14 = arith.maximumf %12, %13 : vector<8x128xf32>
    %c0_11 = arith.constant 0 : index
    %c0_12 = arith.constant 0 : index
    %15 = vector.load %arg4[%c0_11, %c0_12] : memref<128x128xf32, #tpu.memory_space<vmem>>, vector<128x128xf32>
    %cst_13 = arith.constant dense<0.000000e+00> : vector<8x128xf32>
    %16 = tpu.matmul %14, %15, %cst_13 {dimension_numbers = #tpu.dot_dimension_numbers<[1], [0], [0], [1], [0, 0, 1, 1], [], []>} : vector<8x128xf32>, vector<128x128xf32>, vector<8x128xf32> -> vector<8x128xf32>
    %c0_14 = arith.constant 0 : index
    %c256 = arith.constant 256 : index
    %17 = vector.load %arg5[%c0_14, %c256] : memref<1x384xf32, #tpu.memory_space<vmem>>, vector<1x128xf32>
    %18 = vector.broadcast %17 : vector<1x128xf32> to vector<8x128xf32>
    %19 = arith.addf %16, %18 : vector<8x128xf32>
    %20 = tpu.iota {dimensions = array<i32: 1>} : vector<8x128xi32>
    %c10_i32 = arith.constant 10 : i32
    %21 = vector.broadcast %c10_i32 : i32 to vector<8x128xi32>
    %22 = arith.cmpi slt, %20, %21 : vector<8x128xi32>
    %cst_15 = arith.constant -3.40282347E+38 : f32
    %23 = vector.broadcast %cst_15 : f32 to vector<8x128xf32>
    %24 = arith.select %22, %19, %23 : vector<8x128xi1>, vector<8x128xf32>
    %cst_16 = arith.constant dense<0xFF800000> : vector<8xf32>
    %25 = vector.multi_reduction <maximumf>, %24, %cst_16 [1] : vector<8x128xf32> to vector<8xf32>
    %26 = vector.shape_cast %25 : vector<8xf32> to vector<8x1xf32>
    %27 = vector.broadcast %26 : vector<8x1xf32> to vector<8x128xf32>
    %28 = arith.subf %24, %27 : vector<8x128xf32>
    %29 = math.exp %28 : vector<8x128xf32>
    %cst_17 = arith.constant dense<0.000000e+00> : vector<8xf32>
    %30 = vector.multi_reduction <add>, %29, %cst_17 [1] : vector<8x128xf32> to vector<8xf32>
    %31 = vector.shape_cast %30 : vector<8xf32> to vector<8x1xf32>
    %32 = math.log %31 : vector<8x1xf32>
    %33 = vector.broadcast %32 : vector<8x1xf32> to vector<8x128xf32>
    %34 = arith.subf %28, %33 : vector<8x128xf32>
    %c0_18 = arith.constant 0 : index
    %c0_19 = arith.constant 0 : index
    %35 = vector.load %arg6[%c0_18, %c0_19] : memref<8x128xf32, #tpu.memory_space<vmem>>, vector<8x128xf32>
    tpu.vector_store %arg6[%c0_18, %c0_19], %34 {strides = array<i32>} : memref<8x128xf32, #tpu.memory_space<vmem>>, vector<8x128xf32>,
    return
  }
  func.func @transform_0(%arg0: i32) -> (i32, i32) {
    %c0_i32 = arith.constant 0 : i32
    %c0_i32_0 = arith.constant 0 : i32
    return %arg0, %c0_i32 : i32, i32
  }
  func.func @transform_1(%arg0: i32) -> (i32, i32) {
    %c0_i32 = arith.constant 0 : i32
    %c0_i32_0 = arith.constant 0 : i32
    %c0_i32_1 = arith.constant 0 : i32
    return %c0_i32, %c0_i32_0 : i32, i32
  }
  func.func @transform_2(%arg0: i32) -> (i32, i32) {
    %c0_i32 = arith.constant 0 : i32
    %c0_i32_0 = arith.constant 0 : i32
    %c0_i32_1 = arith.constant 0 : i32
    return %c0_i32, %c0_i32_0 : i32, i32
  }
  func.func @transform_3(%arg0: i32) -> (i32, i32) {
    %c0_i32 = arith.constant 0 : i32
    %c0_i32_0 = arith.constant 0 : i32
    %c0_i32_1 = arith.constant 0 : i32
    return %c0_i32, %c0_i32_0 : i32, i32
  }
  func.func @transform_4(%arg0: i32) -> (i32, i32) {
    %c0_i32 = arith.constant 0 : i32
    %c0_i32_0 = arith.constant 0 : i32
    %c0_i32_1 = arith.constant 0 : i32
    return %c0_i32, %c0_i32_0 : i32, i32
  }
  func.func @transform_5(%arg0: i32) -> (i32, i32) {
    %c0_i32 = arith.constant 0 : i32
    %c0_i32_0 = arith.constant 0 : i32
    return %arg0, %c0_i32 : i32, i32
  }
}

module attributes {stable_mosaic.version = 11 : i64} {
  func.func @_fused_mlp_kernel(%arg0: i32, %arg1: memref<8x128xf32, #tpu.memory_space<vmem>>, %arg2: memref<128x128xf32, #tpu.memory_space<vmem>>, %arg3: memref<128x128xf32, #tpu.memory_space<vmem>>, %arg4: memref<128x128xf32, #tpu.memory_space<vmem>>, %arg5: memref<1x384xf32, #tpu.memory_space<vmem>>, %arg6: memref<8x128xf32, #tpu.memory_space<vmem>>) attributes {dimension_semantics = [#tpu.dimension_semantics<parallel>], iteration_bounds = array<i64: 1>, scalar_prefetch = 0 : i64, scratch_operands = 0 : i64, tpu.core_type = #tpu.core_type<tc>, window_params = [{transform_indices = @transform_0, window_bounds = array<i64: 8, 128>}, {pipeline_mode = #tpu.pipeline_mode<synchronous>, transform_indices = @transform_1, window_bounds = array<i64: 128, 128>}, {pipeline_mode = #tpu.pipeline_mode<synchronous>, transform_indices = @transform_2, window_bounds = array<i64: 128, 128>}, {pipeline_mode = #tpu.pipeline_mode<synchronous>, transform_indices = @transform_3, window_bounds = array<i64: 128, 128>}, {pipeline_mode = #tpu.pipeline_mode<synchronous>, transform_indices = @transform_4, window_bounds = array<i64: 1, 384>}, {transform_indices = @transform_5, window_bounds = array<i64: 8, 128>}]} {
    %c0 = arith.constant 0 : index
    %c0_0 = arith.constant 0 : index
    %0 = vector.load %arg1[%c0, %c0_0] : memref<8x128xf32, #tpu.memory_space<vmem>>, vector<8x128xf32>
    %c0_1 = arith.constant 0 : index
    %c0_2 = arith.constant 0 : index
    %1 = vector.load %arg2[%c0_1, %c0_2] : memref<128x128xf32, #tpu.memory_space<vmem>>, vector<128x128xf32>
    %cst = arith.constant dense<0.000000e+00> : vector<8x128xf32>
    %2 = tpu.matmul %0, %1, %cst {dimension_numbers = #tpu.dot_dimension_numbers<[1], [0], [0], [1], [0, 0, 1, 1], [], []>} : vector<8x128xf32>, vector<128x128xf32>, vector<8x128xf32> -> vector<8x128xf32>
    %c0_3 = arith.constant 0 : index
    %c0_4 = arith.constant 0 : index
    %3 = vector.load %arg5[%c0_3, %c0_4] : memref<1x384xf32, #tpu.memory_space<vmem>>, vector<1x128xf32>
    %4 = vector.broadcast %3 : vector<1x128xf32> to vector<8x128xf32>
    %5 = arith.addf %2, %4 : vector<8x128xf32>
    %cst_5 = arith.constant 0.000000e+00 : f32
    %6 = vector.broadcast %cst_5 : f32 to vector<8x128xf32>
    %7 = arith.maximumf %5, %6 : vector<8x128xf32>
    %c0_6 = arith.constant 0 : index
    %c0_7 = arith.constant 0 : index
    %8 = vector.load %arg3[%c0_6, %c0_7] : memref<128x128xf32, #tpu.memory_space<vmem>>, vector<128x128xf32>
    %cst_8 = arith.constant dense<0.000000e+00> : vector<8x128xf32>
    %9 = tpu.matmul %7, %8, %cst_8 {dimension_numbers = #tpu.dot_dimension_numbers<[1], [0], [0], [1], [0, 0, 1, 1], [], []>} : vector<8x128xf32>, vector<128x128xf32>, vector<8x128xf32> -> vector<8x128xf32>
    %c0_9 = arith.constant 0 : index
    %c128 = arith.constant 128 : index
    %10 = vector.load %arg5[%c0_9, %c128] : memref<1x384xf32, #tpu.memory_space<vmem>>, vector<1x128xf32>
    %11 = vector.broadcast %10 : vector<1x128xf32> to vector<8x128xf32>
    %12 = arith.addf %9, %11 : vector<8x128xf32>
    %cst_10 = arith.constant 0.000000e+00 : f32
    %13 = vector.broadcast %cst_10 : f32 to vector<8x128xf32>
    %14 = arith.maximumf %12, %13 : vector<8x128xf32>
    %c0_11 = arith.constant 0 : index
    %c0_12 = arith.constant 0 : index
    %15 = vector.load %arg4[%c0_11, %c0_12] : memref<128x128xf32, #tpu.memory_space<vmem>>, vector<128x128xf32>
    %cst_13 = arith.constant dense<0.000000e+00> : vector<8x128xf32>
    %16 = tpu.matmul %14, %15, %cst_13 {dimension_numbers = #tpu.dot_dimension_numbers<[1], [0], [0], [1], [0, 0, 1, 1], [], []>} : vector<8x128xf32>, vector<128x128xf32>, vector<8x128xf32> -> vector<8x128xf32>
    %c0_14 = arith.constant 0 : index
    %c256 = arith.constant 256 : index
    %17 = vector.load %arg5[%c0_14, %c256] : memref<1x384xf32, #tpu.memory_space<vmem>>, vector<1x128xf32>
    %18 = vector.broadcast %17 : vector<1x128xf32> to vector<8x128xf32>
    %19 = arith.addf %16, %18 : vector<8x128xf32>
    %20 = tpu.iota {dimensions = array<i32: 1>} : vector<8x128xi32>
    %c10_i32 = arith.constant 10 : i32
    %21 = vector.broadcast %c10_i32 : i32 to vector<8x128xi32>
    %22 = arith.cmpi slt, %20, %21 : vector<8x128xi32>
    %cst_15 = arith.constant -3.40282347E+38 : f32
    %23 = vector.broadcast %cst_15 : f32 to vector<8x128xf32>
    %24 = arith.select %22, %19, %23 : vector<8x128xi1>, vector<8x128xf32>
    %cst_16 = arith.constant dense<0xFF800000> : vector<8xf32>
    %25 = vector.multi_reduction <maximumf>, %24, %cst_16 [1] : vector<8x128xf32> to vector<8xf32>
    %26 = vector.shape_cast %25 : vector<8xf32> to vector<8x1xf32>
    %27 = vector.broadcast %26 : vector<8x1xf32> to vector<8x128xf32>
    %28 = arith.subf %24, %27 : vector<8x128xf32>
    %29 = math.exp %28 : vector<8x128xf32>
    %cst_17 = arith.constant dense<0.000000e+00> : vector<8xf32>
    %30 = vector.multi_reduction <add>, %29, %cst_17 [1] : vector<8x128xf32> to vector<8xf32>
    %31 = vector.shape_cast %30 : vector<8xf32> to vector<8x1xf32>
    %32 = math.log %31 : vector<8x1xf32>
    %33 = vector.broadcast %32 : vector<8x1xf32> to vector<8x128xf32>
    %34 = arith.subf %28, %33 : vector<8x128xf32>
    %c0_18 = arith.constant 0 : index
    %c0_19 = arith.constant 0 : index
    %35 = vector.load %arg6[%c0_18, %c0_19] : memref<8x128xf32, #tpu.memory_space<vmem>>, vector<8x128xf32>
    tpu.vector_store %arg6[%c0_18, %c0_19], %34 {strides = array<i32>} : memref<8x128xf32, #tpu.memory_space<vmem>>, vector<8x128xf32>,
    return
  }
  func.func @transform_0(%arg0: i32) -> (i32, i32) {
    %c0_i32 = arith.constant 0 : i32
    %c0_i32_0 = arith.constant 0 : i32
    return %arg0, %c0_i32 : i32, i32
  }
  func.func @transform_1(%arg0: i32) -> (i32, i32) {
    %c0_i32 = arith.constant 0 : i32
    %c0_i32_0 = arith.constant 0 : i32
    %c0_i32_1 = arith.constant 0 : i32
    return %c0_i32, %c0_i32_0 : i32, i32
  }
  func.func @transform_2(%arg0: i32) -> (i32, i32) {
    %c0_i32 = arith.constant 0 : i32
    %c0_i32_0 = arith.constant 0 : i32
    %c0_i32_1 = arith.constant 0 : i32
    return %c0_i32, %c0_i32_0 : i32, i32
  }
  func.func @transform_3(%arg0: i32) -> (i32, i32) {
    %c0_i32 = arith.constant 0 : i32
    %c0_i32_0 = arith.constant 0 : i32
    %c0_i32_1 = arith.constant 0 : i32
    return %c0_i32, %c0_i32_0 : i32, i32
  }
  func.func @transform_4(%arg0: i32) -> (i32, i32) {
    %c0_i32 = arith.constant 0 : i32
    %c0_i32_0 = arith.constant 0 : i32
    %c0_i32_1 = arith.constant 0 : i32
    return %c0_i32, %c0_i32_0 : i32, i32
  }
  func.func @transform_5(%arg0: i32) -> (i32, i32) {
    %c0_i32 = arith.constant 0 : i32
    %c0_i32_0 = arith.constant 0 : i32
    return %arg0, %c0_i32 : i32, i32
  }
}

</mosaic_0001>

<bundles_post_ra>
// kernel: tpu_custom_call.1
= control target key start
LH: loop header
LB: loop body
LE: loop exit
PB: predicated region body
PF: predicated region fallthrough
CT: control target
= control target key end

     0   :  { %10 = vsyncpa [#allocation3], 0  ;;  %s442_s0 = inlined_call_operand.hbm [shape: f32[8,128], index: 0, kind: input, shape index: {}]   ;;  %s443_s1 = inlined_call_operand.hbm [shape: f32[128,128], index: 1, kind: input, shape index: {}]   ;;  %s444_s2 = inlined_call_operand.hbm [shape: f32[128,128], index: 2, kind: input, shape index: {}]   ;;  %s445_s3 = inlined_call_operand.hbm [shape: f32[128,128], index: 3, kind: input, shape index: {}]   ;;  %s446_s4 = inlined_call_operand.vmem [shape: f32[1,384], index: 4, kind: input, shape index: {}]   ;;  %s447_s5 = inlined_call_operand.hbm [shape: f32[8,128], index: 5, kind: output, shape index: {}]  }
   0x1   :  { %11 = vsyncpa [#allocation6], 0 }
   0x2   :  { %12 = vsyncpa [#allocation9], 0  ;;  %s29_s20 = sshll.u32 %s443_s1, 4  ;;  %s30_s20 = int_to_ptr.hbm [resolvable:$true] %s29_s20 }
   0x3   :  { %13 = vsyncpa [#allocation4], 0  ;;  %s381_s21 = smov [#allocation5]   ;;  %s19_s25 = sshll.u32 %s442_s0, 4  ;;  %s20_s25 = int_to_ptr.hbm [resolvable:$true] %s19_s25 }
   0x4   :  { %s31_s22 = sshll.u32 %s381_s21, 4  ;;  %s382_s26 = smov 128   ;;  %s32_s22 = int_to_ptr.vmem [resolvable:$true] %s31_s22 }
   0x5   :  { %s383_s27 = smov 8   ;;  %s384_s28 = smov [#allocation2]  }
   0x6   :  { %37 = dma.hbm_to_vmem [thread:$0]  %s30_s20, 2048, %s32_s22, [#allocation6], %s382_s26, %s382_s26, %s383_s27  }
   0x7   :  { %s21_s29 = sshll.u32 %s384_s28, 4  ;;  %s42_s7 = sshll.u32 %s444_s2, 4  ;;  %s22_s29 = int_to_ptr.vmem [resolvable:$true] %s21_s29  ;;  %s43_s7 = int_to_ptr.hbm [resolvable:$true] %s42_s7 }
   0x8   :  { %24 = dma.hbm_to_vmem [thread:$0]  %s20_s25, 128, %s22_s29, [#allocation3]  }
   0x9   :  { %s55_s9 = sshll.u32 %s445_s3, 4  ;;  %s385_s10 = smov [#allocation7]   ;;  %s56_s9 = int_to_ptr.hbm [resolvable:$true] %s55_s9 }
   0xa   :  { %s44_s11 = sshll.u32 %s385_s10, 4  ;;  %s386_s0 = smov [#allocation8]   ;;  %s45_s11 = int_to_ptr.vmem [resolvable:$true] %s44_s11 }
   0xb   :  { %50 = dma.hbm_to_vmem [thread:$0]  %s43_s7, 2048, %s45_s11, [#allocation6], %s382_s26, %s382_s26, %s383_s27  }
   0xc   :  { %s57_s12 = sshll.u32 %s386_s0, 4  ;;  %s58_s12 = int_to_ptr.vmem [resolvable:$true] %s57_s12 }
   0xd   :  { %63 = dma.hbm_to_vmem [thread:$0]  %s56_s9, 2048, %s58_s12, [#allocation9], %s382_s26, %s382_s26, %s383_s27  }
   0xe   :  { %373 = dma.done.wait [#allocation3], 128  }
   0xf   :  { %374 = vsyncadd [#allocation3], 4294967168 }
  0x10   :  { %375 = dma.done.wait [#allocation6], 4096  }
  0x11   :  { %376 = vsyncadd [#allocation6], 4294963200 }
  0x12   :  { %377 = dma.done.wait [#allocation9], 2048  }
  0x13   :  { %378 = vsyncadd [#allocation9], 4294965248  ;;  %v98_v0 = vld [vmem:[#allocation5 + $0x78] sm:$0xff]  ;;  %v97_v1 = vld [vmem:[#allocation5 + $0x70] sm:$0xff]  ;;  %v205_v57 = vlaneseq  ;;  %s387_s17 = smov [#allocation10]  }
  0x14   :  { %103 = vmatpush.msra.mxu0 %v98_v0  ;;  %v96_v2 = vld [vmem:[#allocation5 + $0x68] sm:$0xff]  ;;  %v95_v3 = vld [vmem:[#allocation5 + $0x60] sm:$0xff]  ;;  %v139_v4 = vld [vmem:[#allocation7 + $0x78] sm:$0xff]  ;;  %s225_s18 = sshll.u32 %s387_s17, 4  ;;  %s226_s18 = int_to_ptr.vmem [resolvable:$true] %s225_s18 }
  0x15   :  { %v94_v5 = vld [vmem:[#allocation5 + $0x58] sm:$0xff]  ;;  %144 = vmatpush.msra.mxu1 %v139_v4  ;;  %v138_v6 = vld [vmem:[#allocation7 + $0x70] sm:$0xff]  ;;  %v137_v7 = vld [vmem:[#allocation7 + $0x68] sm:$0xff]  ;;  %v206_v58 = vand.u32 127, %v205_v57 }
  0x16   :  { %104 = vmatpush.msra.mxu0 %v97_v1  ;;  %v93_v8 = vld [vmem:[#allocation5 + $0x50] sm:$0xff]  ;;  %v136_v9 = vld [vmem:[#allocation7 + $0x60] sm:$0xff]  ;;  %v92_v10 = vld [vmem:[#allocation5 + $0x48] sm:$0xff] }
  0x17   :  { %145 = vmatpush.msra.mxu1 %v138_v6  ;;  %v135_v11 = vld [vmem:[#allocation7 + $0x58] sm:$0xff]  ;;  %v91_v12 = vld [vmem:[#allocation5 + $0x40] sm:$0xff]  ;;  %v134_v13 = vld [vmem:[#allocation7 + $0x50] sm:$0xff]  ;;  %vm207_vm0 = vcmp.lt.s32.totalorder %v206_v58, 10 }
  0x18   :  { %105 = vmatpush.msra.mxu0 %v96_v2  ;;  %v90_v14 = vld [vmem:[#allocation5 + $0x38] sm:$0xff]  ;;  %v133_v15 = vld [vmem:[#allocation7 + $0x48] sm:$0xff]  ;;  %v89_v16 = vld [vmem:[#allocation5 + $0x30] sm:$0xff] }
  0x19   :  { %146 = vmatpush.msra.mxu1 %v137_v7  ;;  %v132_v17 = vld [vmem:[#allocation7 + $0x40] sm:$0xff]  ;;  %v88_v18 = vld [vmem:[#allocation5 + $0x28] sm:$0xff]  ;;  %v131_v19 = vld [vmem:[#allocation7 + $0x38] sm:$0xff] }
  0x1a   :  { %106 = vmatpush.msra.mxu0 %v95_v3  ;;  %v87_v20 = vld [vmem:[#allocation5 + $0x20] sm:$0xff]  ;;  %v130_v21 = vld [vmem:[#allocation7 + $0x30] sm:$0xff]  ;;  %v86_v22 = vld [vmem:[#allocation5 + $0x18] sm:$0xff] }
  0x1b   :  { %147 = vmatpush.msra.mxu1 %v136_v9  ;;  %v129_v23 = vld [vmem:[#allocation7 + $0x28] sm:$0xff]  ;;  %v85_v24 = vld [vmem:[#allocation5 + $0x10] sm:$0xff]  ;;  %v128_v25 = vld [vmem:[#allocation7 + $0x20] sm:$0xff] }
  0x1c   :  { %107 = vmatpush.msra.mxu0 %v94_v5  ;;  %v84_v26 = vld [vmem:[#allocation5 + $0x8] sm:$0xff]  ;;  %v127_v27 = vld [vmem:[#allocation7 + $0x18] sm:$0xff]  ;;  %v83_v28 = vld [vmem:[#allocation5] sm:$0xff] }
  0x1d   :  { %148 = vmatpush.msra.mxu1 %v135_v11  ;;  %v82_v29 = vld [vmem:[#allocation2] sm:$0xff]  ;;  %v126_v30 = vld [vmem:[#allocation7 + $0x10] sm:$0xff]  ;;  %v125_v31 = vld [vmem:[#allocation7 + $0x8] sm:$0xff] }
  0x1e   :  { %108 = vmatpush.msra.mxu0 %v93_v8  ;;  %v124_v32 = vld [vmem:[#allocation7] sm:$0xff]  ;;  %v180_v33 = vld [vmem:[#allocation8 + $0x78] sm:$0xff]  ;;  %v179_v34 = vld [vmem:[#allocation8 + $0x70] sm:$0xff] }
  0x1f   :  { %149 = vmatpush.msra.mxu1 %v134_v13  ;;  %185 = vmatpush.msra.mxu2 %v180_v33  ;;  %v178_v35 = vld [vmem:[#allocation8 + $0x68] sm:$0xff]  ;;  %v177_v36 = vld [vmem:[#allocation8 + $0x60] sm:$0xff]  ;;  %v176_v37 = vld [vmem:[#allocation8 + $0x58] sm:$0xff] }
  0x20   :  { %109 = vmatpush.msra.mxu0 %v92_v10  ;;  %v175_v38 = vld [vmem:[#allocation8 + $0x50] sm:$0xff]  ;;  %v174_v39 = vld [vmem:[#allocation8 + $0x48] sm:$0xff]  ;;  %v173_v40 = vld [vmem:[#allocation8 + $0x40] sm:$0xff] }
  0x21   :  { %150 = vmatpush.msra.mxu1 %v133_v15  ;;  %186 = vmatpush.msra.mxu2 %v179_v34  ;;  %v172_v41 = vld [vmem:[#allocation8 + $0x38] sm:$0xff]  ;;  %v171_v42 = vld [vmem:[#allocation8 + $0x30] sm:$0xff]  ;;  %v170_v43 = vld [vmem:[#allocation8 + $0x28] sm:$0xff] }
  0x22   :  { %110 = vmatpush.msra.mxu0 %v91_v12  ;;  %v169_v44 = vld [vmem:[#allocation8 + $0x20] sm:$0xff]  ;;  %v168_v45 = vld [vmem:[#allocation8 + $0x18] sm:$0xff]  ;;  %v167_v50 = vld [vmem:[#allocation8 + $0x10] sm:$0xff] }
  0x23   :  { %151 = vmatpush.msra.mxu1 %v132_v17  ;;  %187 = vmatpush.msra.mxu2 %v178_v35  ;;  %v246_v46 = vld [vmem:[%s446_s4] ss:$0 sm:$0xff]  ;;  %v166_v51 = vld [vmem:[#allocation8 + $0x8] sm:$0xff]  ;;  %v165_v52 = vld [vmem:[#allocation8] sm:$0xff] }
  0x24   :  { %111 = vmatpush.msra.mxu0 %v90_v14  ;;  %v247_v53 = vld [vmem:[%s446_s4 + $0x1] ss:$0 sm:$0xff]  ;;  %v248_v59 = vld [vmem:[%s446_s4 + $0x2] ss:$0 sm:$0xff]  ;;  %s227_s4 = sshll.u32 %s447_s5, 4  ;;  %s228_s4 = int_to_ptr.hbm [resolvable:$true] %s227_s4 }
  0x25   :  { %152 = vmatpush.msra.mxu1 %v131_v19  ;;  %188 = vmatpush.msra.mxu2 %v177_v36 }
  0x26   :  { %112 = vmatpush.msra.mxu0 %v89_v16 }
  0x27   :  { %153 = vmatpush.msra.mxu1 %v130_v21  ;;  %189 = vmatpush.msra.mxu2 %v176_v37 }
  0x28   :  { %113 = vmatpush.msra.mxu0 %v88_v18 }
  0x29   :  { %154 = vmatpush.msra.mxu1 %v129_v23  ;;  %190 = vmatpush.msra.mxu2 %v175_v38 }
  0x2a   :  { %114 = vmatpush.msra.mxu0 %v87_v20 }
  0x2b   :  { %155 = vmatpush.msra.mxu1 %v128_v25  ;;  %191 = vmatpush.msra.mxu2 %v174_v39 }
  0x2c   :  { %115 = vmatpush.msra.mxu0 %v86_v22 }
  0x2d   :  { %156 = vmatpush.msra.mxu1 %v127_v27  ;;  %192 = vmatpush.msra.mxu2 %v173_v40 }
  0x2e   :  { %116 = vmatpush.msra.mxu0 %v85_v24 }
  0x2f   :  { %157 = vmatpush.msra.mxu1 %v126_v30  ;;  %193 = vmatpush.msra.mxu2 %v172_v41 }
  0x30   :  { %117 = vmatpush.msra.mxu0 %v84_v26 }
  0x31   :  { %158 = vmatpush.msra.mxu1 %v125_v31  ;;  %194 = vmatpush.msra.mxu2 %v171_v42 }
  0x32   :  { %118 = vmatpush.msra.mxu0 %v83_v28 }
  0x33   :  { %119 = vmatmul.f32.vlgmr.msra.gmra.mxu0 %v82_v29  ;;  %159 = vmatpush.msra.mxu1 %v124_v32 }
  0x34   :  { %195 = vmatpush.msra.mxu2 %v170_v43 }
  0x36   :  { %196 = vmatpush.msra.mxu2 %v169_v44 }
  0x38   :  { %197 = vmatpush.msra.mxu2 %v168_v45 }
  0x3a   :  { %198 = vmatpush.msra.mxu2 %v167_v50 }
  0x3c   :  { %199 = vmatpush.msra.mxu2 %v166_v51 }
  0x3e   :  { %200 = vmatpush.msra.mxu2 %v165_v52 }
  0xb0   :  { %v120_v47 = vpop.f32.mrf.mxu0 }
  0xb1   :  { %v121_v48 = vadd.f32 %v246_v46, %v120_v47 }
  0xb3   :  { %v123_v49 = vmax.f32 %v121_v48, 0.0 }
  0xb5   :  { %160 = vmatmul.f32.vlgmr.msra.gmra.mxu1 %v123_v49 }
 0x132   :  { %v161_v54 = vpop.f32.mrf.mxu1 }
 0x133   :  { %v162_v55 = vadd.f32 %v247_v53, %v161_v54 }
 0x135   :  { %v164_v56 = vmax.f32 %v162_v55, 0.0 }
 0x137   :  { %201 = vmatmul.f32.vlgmr.msra.gmra.mxu2 %v164_v56 }
 0x1ba   :  { %v202_v60 = vpop.f32.mrf.mxu2 }
 0x1bb   :  { %v203_v61 = vadd.f32 %v248_v59, %v202_v60 }
 0x1bd   :  { %v208_v62 = vsel %vm207_vm0, %v203_v61, -3.4028235e+38 }
 0x1be   :  { %209 = vmax.xlane.f32.xlu0 %v208_v62 }
 0x231   :  { %v210_v63 = vpop.xlane.xlu0 %209 }
 0x232   :  { %v211_v0 = vsub.f32 %v208_v62, %v210_v63 }
 0x234   :  { %v212_v1 = vmul.f32 1.442695, %v211_v0 }
 0x236   :  { %249 = vpow2.f32 %v212_v1 }
 0x23c   :  { %v250_v2 = vpop.eup %249 }
 0x23d   :  { %214 = vadd.xlane.f32.xlu0 %v250_v2 }
 0x2b0   :  { %v215_v3 = vpop.xlane.xlu0 %214 }
 0x2b1   :  { %251 = vlog2.f32 %v215_v3 }
 0x2b7   :  { %v252_v4 = vpop.eup %251 }
 0x2b8   :  { %v217_v5 = vmul.f32 0.6931472, %v252_v4 }
 0x2ba   :  { %v218_v6 = vsub.f32 %v211_v0, %v217_v5 }
 0x2bc   :  { %219 = vst [vmem:[#allocation10] sm:$0xff] %v218_v6 }
 0x2bd   :  { %230 = dma.vmem_to_hbm [thread:$0]  %s226_s18, 128, %s228_s4, [#allocation4]  }
 0x2be   :  { %379 = dma.done.wait [#allocation4], 128  }
 0x2bf   :  { %380 = vsyncadd [#allocation4], 4294967168 }
 0x2c0   :  { %235 = vsyncpa [#allocation3], 1 }
 0x2c1   :  { %236 = vsyncpa [#allocation6], 1 }
 0x2c2   :  { %237 = vsyncpa [#allocation9], 1 }
 0x2c3   :  { %238 = vsyncpa [#allocation4], 1 }

// kernel: tpu_custom_call.1
= control target key start
LH: loop header
LB: loop body
LE: loop exit
PB: predicated region body
PF: predicated region fallthrough
CT: control target
= control target key end

     0   :  { %10 = vsyncpa [#allocation3], 0  ;;  %s442_s0 = inlined_call_operand.hbm [shape: f32[8,128], index: 0, kind: input, shape index: {}]   ;;  %s443_s1 = inlined_call_operand.hbm [shape: f32[128,128], index: 1, kind: input, shape index: {}]   ;;  %s444_s2 = inlined_call_operand.hbm [shape: f32[128,128], index: 2, kind: input, shape index: {}]   ;;  %s445_s3 = inlined_call_operand.hbm [shape: f32[128,128], index: 3, kind: input, shape index: {}]   ;;  %s446_s4 = inlined_call_operand.vmem [shape: f32[1,384], index: 4, kind: input, shape index: {}]   ;;  %s447_s5 = inlined_call_operand.hbm [shape: f32[8,128], index: 5, kind: output, shape index: {}]  }
   0x1   :  { %11 = vsyncpa [#allocation6], 0 }
   0x2   :  { %12 = vsyncpa [#allocation9], 0  ;;  %s29_s20 = sshll.u32 %s443_s1, 4  ;;  %s30_s20 = int_to_ptr.hbm [resolvable:$true] %s29_s20 }
   0x3   :  { %13 = vsyncpa [#allocation4], 0  ;;  %s381_s21 = smov [#allocation5]   ;;  %s19_s25 = sshll.u32 %s442_s0, 4  ;;  %s20_s25 = int_to_ptr.hbm [resolvable:$true] %s19_s25 }
   0x4   :  { %s31_s22 = sshll.u32 %s381_s21, 4  ;;  %s382_s26 = smov 128   ;;  %s32_s22 = int_to_ptr.vmem [resolvable:$true] %s31_s22 }
   0x5   :  { %s383_s27 = smov 8   ;;  %s384_s28 = smov [#allocation2]  }
   0x6   :  { %37 = dma.hbm_to_vmem [thread:$0]  %s30_s20, 2048, %s32_s22, [#allocation6], %s382_s26, %s382_s26, %s383_s27  }
   0x7   :  { %s21_s29 = sshll.u32 %s384_s28, 4  ;;  %s42_s7 = sshll.u32 %s444_s2, 4  ;;  %s22_s29 = int_to_ptr.vmem [resolvable:$true] %s21_s29  ;;  %s43_s7 = int_to_ptr.hbm [resolvable:$true] %s42_s7 }
   0x8   :  { %24 = dma.hbm_to_vmem [thread:$0]  %s20_s25, 128, %s22_s29, [#allocation3]  }
   0x9   :  { %s55_s9 = sshll.u32 %s445_s3, 4  ;;  %s385_s10 = smov [#allocation7]   ;;  %s56_s9 = int_to_ptr.hbm [resolvable:$true] %s55_s9 }
   0xa   :  { %s44_s11 = sshll.u32 %s385_s10, 4  ;;  %s386_s0 = smov [#allocation8]   ;;  %s45_s11 = int_to_ptr.vmem [resolvable:$true] %s44_s11 }
   0xb   :  { %50 = dma.hbm_to_vmem [thread:$0]  %s43_s7, 2048, %s45_s11, [#allocation6], %s382_s26, %s382_s26, %s383_s27  }
   0xc   :  { %s57_s12 = sshll.u32 %s386_s0, 4  ;;  %s58_s12 = int_to_ptr.vmem [resolvable:$true] %s57_s12 }
   0xd   :  { %63 = dma.hbm_to_vmem [thread:$0]  %s56_s9, 2048, %s58_s12, [#allocation9], %s382_s26, %s382_s26, %s383_s27  }
   0xe   :  { %373 = dma.done.wait [#allocation3], 128  }
   0xf   :  { %374 = vsyncadd [#allocation3], 4294967168 }
  0x10   :  { %375 = dma.done.wait [#allocation6], 4096  }
  0x11   :  { %376 = vsyncadd [#allocation6], 4294963200 }
  0x12   :  { %377 = dma.done.wait [#allocation9], 2048  }
  0x13   :  { %378 = vsyncadd [#allocation9], 4294965248  ;;  %v98_v0 = vld [vmem:[#allocation5 + $0x78] sm:$0xff]  ;;  %v97_v1 = vld [vmem:[#allocation5 + $0x70] sm:$0xff]  ;;  %v205_v57 = vlaneseq  ;;  %s387_s17 = smov [#allocation10]  }
  0x14   :  { %103 = vmatpush.msra.mxu0 %v98_v0  ;;  %v96_v2 = vld [vmem:[#allocation5 + $0x68] sm:$0xff]  ;;  %v95_v3 = vld [vmem:[#allocation5 + $0x60] sm:$0xff]  ;;  %v139_v4 = vld [vmem:[#allocation7 + $0x78] sm:$0xff]  ;;  %s225_s18 = sshll.u32 %s387_s17, 4  ;;  %s226_s18 = int_to_ptr.vmem [resolvable:$true] %s225_s18 }
  0x15   :  { %v94_v5 = vld [vmem:[#allocation5 + $0x58] sm:$0xff]  ;;  %144 = vmatpush.msra.mxu1 %v139_v4  ;;  %v138_v6 = vld [vmem:[#allocation7 + $0x70] sm:$0xff]  ;;  %v137_v7 = vld [vmem:[#allocation7 + $0x68] sm:$0xff]  ;;  %v206_v58 = vand.u32 127, %v205_v57 }
  0x16   :  { %104 = vmatpush.msra.mxu0 %v97_v1  ;;  %v93_v8 = vld [vmem:[#allocation5 + $0x50] sm:$0xff]  ;;  %v136_v9 = vld [vmem:[#allocation7 + $0x60] sm:$0xff]  ;;  %v92_v10 = vld [vmem:[#allocation5 + $0x48] sm:$0xff] }
  0x17   :  { %145 = vmatpush.msra.mxu1 %v138_v6  ;;  %v135_v11 = vld [vmem:[#allocation7 + $0x58] sm:$0xff]  ;;  %v91_v12 = vld [vmem:[#allocation5 + $0x40] sm:$0xff]  ;;  %v134_v13 = vld [vmem:[#allocation7 + $0x50] sm:$0xff]  ;;  %vm207_vm0 = vcmp.lt.s32.totalorder %v206_v58, 10 }
  0x18   :  { %105 = vmatpush.msra.mxu0 %v96_v2  ;;  %v90_v14 = vld [vmem:[#allocation5 + $0x38] sm:$0xff]  ;;  %v133_v15 = vld [vmem:[#allocation7 + $0x48] sm:$0xff]  ;;  %v89_v16 = vld [vmem:[#allocation5 + $0x30] sm:$0xff] }
  0x19   :  { %146 = vmatpush.msra.mxu1 %v137_v7  ;;  %v132_v17 = vld [vmem:[#allocation7 + $0x40] sm:$0xff]  ;;  %v88_v18 = vld [vmem:[#allocation5 + $0x28] sm:$0xff]  ;;  %v131_v19 = vld [vmem:[#allocation7 + $0x38] sm:$0xff] }
  0x1a   :  { %106 = vmatpush.msra.mxu0 %v95_v3  ;;  %v87_v20 = vld [vmem:[#allocation5 + $0x20] sm:$0xff]  ;;  %v130_v21 = vld [vmem:[#allocation7 + $0x30] sm:$0xff]  ;;  %v86_v22 = vld [vmem:[#allocation5 + $0x18] sm:$0xff] }
  0x1b   :  { %147 = vmatpush.msra.mxu1 %v136_v9  ;;  %v129_v23 = vld [vmem:[#allocation7 + $0x28] sm:$0xff]  ;;  %v85_v24 = vld [vmem:[#allocation5 + $0x10] sm:$0xff]  ;;  %v128_v25 = vld [vmem:[#allocation7 + $0x20] sm:$0xff] }
  0x1c   :  { %107 = vmatpush.msra.mxu0 %v94_v5  ;;  %v84_v26 = vld [vmem:[#allocation5 + $0x8] sm:$0xff]  ;;  %v127_v27 = vld [vmem:[#allocation7 + $0x18] sm:$0xff]  ;;  %v83_v28 = vld [vmem:[#allocation5] sm:$0xff] }
  0x1d   :  { %148 = vmatpush.msra.mxu1 %v135_v11  ;;  %v82_v29 = vld [vmem:[#allocation2] sm:$0xff]  ;;  %v126_v30 = vld [vmem:[#allocation7 + $0x10] sm:$0xff]  ;;  %v125_v31 = vld [vmem:[#allocation7 + $0x8] sm:$0xff] }
  0x1e   :  { %108 = vmatpush.msra.mxu0 %v93_v8  ;;  %v124_v32 = vld [vmem:[#allocation7] sm:$0xff]  ;;  %v180_v33 = vld [vmem:[#allocation8 + $0x78] sm:$0xff]  ;;  %v179_v34 = vld [vmem:[#allocation8 + $0x70] sm:$0xff] }
  0x1f   :  { %149 = vmatpush.msra.mxu1 %v134_v13  ;;  %185 = vmatpush.msra.mxu2 %v180_v33  ;;  %v178_v35 = vld [vmem:[#allocation8 + $0x68] sm:$0xff]  ;;  %v177_v36 = vld [vmem:[#allocation8 + $0x60] sm:$0xff]  ;;  %v176_v37 = vld [vmem:[#allocation8 + $0x58] sm:$0xff] }
  0x20   :  { %109 = vmatpush.msra.mxu0 %v92_v10  ;;  %v175_v38 = vld [vmem:[#allocation8 + $0x50] sm:$0xff]  ;;  %v174_v39 = vld [vmem:[#allocation8 + $0x48] sm:$0xff]  ;;  %v173_v40 = vld [vmem:[#allocation8 + $0x40] sm:$0xff] }
  0x21   :  { %150 = vmatpush.msra.mxu1 %v133_v15  ;;  %186 = vmatpush.msra.mxu2 %v179_v34  ;;  %v172_v41 = vld [vmem:[#allocation8 + $0x38] sm:$0xff]  ;;  %v171_v42 = vld [vmem:[#allocation8 + $0x30] sm:$0xff]  ;;  %v170_v43 = vld [vmem:[#allocation8 + $0x28] sm:$0xff] }
  0x22   :  { %110 = vmatpush.msra.mxu0 %v91_v12  ;;  %v169_v44 = vld [vmem:[#allocation8 + $0x20] sm:$0xff]  ;;  %v168_v45 = vld [vmem:[#allocation8 + $0x18] sm:$0xff]  ;;  %v167_v50 = vld [vmem:[#allocation8 + $0x10] sm:$0xff] }
  0x23   :  { %151 = vmatpush.msra.mxu1 %v132_v17  ;;  %187 = vmatpush.msra.mxu2 %v178_v35  ;;  %v246_v46 = vld [vmem:[%s446_s4] ss:$0 sm:$0xff]  ;;  %v166_v51 = vld [vmem:[#allocation8 + $0x8] sm:$0xff]  ;;  %v165_v52 = vld [vmem:[#allocation8] sm:$0xff] }
  0x24   :  { %111 = vmatpush.msra.mxu0 %v90_v14  ;;  %v247_v53 = vld [vmem:[%s446_s4 + $0x1] ss:$0 sm:$0xff]  ;;  %v248_v59 = vld [vmem:[%s446_s4 + $0x2] ss:$0 sm:$0xff]  ;;  %s227_s4 = sshll.u32 %s447_s5, 4  ;;  %s228_s4 = int_to_ptr.hbm [resolvable:$true] %s227_s4 }
  0x25   :  { %152 = vmatpush.msra.mxu1 %v131_v19  ;;  %188 = vmatpush.msra.mxu2 %v177_v36 }
  0x26   :  { %112 = vmatpush.msra.mxu0 %v89_v16 }
  0x27   :  { %153 = vmatpush.msra.mxu1 %v130_v21  ;;  %189 = vmatpush.msra.mxu2 %v176_v37 }
  0x28   :  { %113 = vmatpush.msra.mxu0 %v88_v18 }
  0x29   :  { %154 = vmatpush.msra.mxu1 %v129_v23  ;;  %190 = vmatpush.msra.mxu2 %v175_v38 }
  0x2a   :  { %114 = vmatpush.msra.mxu0 %v87_v20 }
  0x2b   :  { %155 = vmatpush.msra.mxu1 %v128_v25  ;;  %191 = vmatpush.msra.mxu2 %v174_v39 }
  0x2c   :  { %115 = vmatpush.msra.mxu0 %v86_v22 }
  0x2d   :  { %156 = vmatpush.msra.mxu1 %v127_v27  ;;  %192 = vmatpush.msra.mxu2 %v173_v40 }
  0x2e   :  { %116 = vmatpush.msra.mxu0 %v85_v24 }
  0x2f   :  { %157 = vmatpush.msra.mxu1 %v126_v30  ;;  %193 = vmatpush.msra.mxu2 %v172_v41 }
  0x30   :  { %117 = vmatpush.msra.mxu0 %v84_v26 }
  0x31   :  { %158 = vmatpush.msra.mxu1 %v125_v31  ;;  %194 = vmatpush.msra.mxu2 %v171_v42 }
  0x32   :  { %118 = vmatpush.msra.mxu0 %v83_v28 }
  0x33   :  { %119 = vmatmul.f32.vlgmr.msra.gmra.mxu0 %v82_v29  ;;  %159 = vmatpush.msra.mxu1 %v124_v32 }
  0x34   :  { %195 = vmatpush.msra.mxu2 %v170_v43 }
  0x36   :  { %196 = vmatpush.msra.mxu2 %v169_v44 }
  0x38   :  { %197 = vmatpush.msra.mxu2 %v168_v45 }
  0x3a   :  { %198 = vmatpush.msra.mxu2 %v167_v50 }
  0x3c   :  { %199 = vmatpush.msra.mxu2 %v166_v51 }
  0x3e   :  { %200 = vmatpush.msra.mxu2 %v165_v52 }
  0xb0   :  { %v120_v47 = vpop.f32.mrf.mxu0 }
  0xb1   :  { %v121_v48 = vadd.f32 %v246_v46, %v120_v47 }
  0xb3   :  { %v123_v49 = vmax.f32 %v121_v48, 0.0 }
  0xb5   :  { %160 = vmatmul.f32.vlgmr.msra.gmra.mxu1 %v123_v49 }
 0x132   :  { %v161_v54 = vpop.f32.mrf.mxu1 }
 0x133   :  { %v162_v55 = vadd.f32 %v247_v53, %v161_v54 }
 0x135   :  { %v164_v56 = vmax.f32 %v162_v55, 0.0 }
 0x137   :  { %201 = vmatmul.f32.vlgmr.msra.gmra.mxu2 %v164_v56 }
 0x1ba   :  { %v202_v60 = vpop.f32.mrf.mxu2 }
 0x1bb   :  { %v203_v61 = vadd.f32 %v248_v59, %v202_v60 }
 0x1bd   :  { %v208_v62 = vsel %vm207_vm0, %v203_v61, -3.4028235e+38 }
 0x1be   :  { %209 = vmax.xlane.f32.xlu0 %v208_v62 }
 0x231   :  { %v210_v63 = vpop.xlane.xlu0 %209 }
 0x232   :  { %v211_v0 = vsub.f32 %v208_v62, %v210_v63 }
 0x234   :  { %v212_v1 = vmul.f32 1.442695, %v211_v0 }
 0x236   :  { %249 = vpow2.f32 %v212_v1 }
 0x23c   :  { %v250_v2 = vpop.eup %249 }
 0x23d   :  { %214 = vadd.xlane.f32.xlu0 %v250_v2 }
 0x2b0   :  { %v215_v3 = vpop.xlane.xlu0 %214 }
 0x2b1   :  { %251 = vlog2.f32 %v215_v3 }
 0x2b7   :  { %v252_v4 = vpop.eup %251 }
 0x2b8   :  { %v217_v5 = vmul.f32 0.6931472, %v252_v4 }
 0x2ba   :  { %v218_v6 = vsub.f32 %v211_v0, %v217_v5 }
 0x2bc   :  { %219 = vst [vmem:[#allocation10] sm:$0xff] %v218_v6 }
 0x2bd   :  { %230 = dma.vmem_to_hbm [thread:$0]  %s226_s18, 128, %s228_s4, [#allocation4]  }
 0x2be   :  { %379 = dma.done.wait [#allocation4], 128  }
 0x2bf   :  { %380 = vsyncadd [#allocation4], 4294967168 }
 0x2c0   :  { %235 = vsyncpa [#allocation3], 1 }
 0x2c1   :  { %236 = vsyncpa [#allocation6], 1 }
 0x2c2   :  { %237 = vsyncpa [#allocation9], 1 }
 0x2c3   :  { %238 = vsyncpa [#allocation4], 1 }

</bundles_post_ra>
